<compile_context>
chip_gen: v5e
topology: v5e:2x2
jax: 0.10.0
libtpu: 0.0.40
codegen_flags: <defaults>
</compile_context>

<pallas_src>
import jax
import jax.numpy as jnp
from jax.experimental import pallas as pl
from jax.experimental.pallas import tpu as pltpu


def _round_up(x, m):
    return (x + m - 1) // m * m


# ---------------------------------------------------------------------------
# Kernel body.  grid = (batch tiles [parallel], hidden chunks [arbitrary]).
# ---------------------------------------------------------------------------
def _mlp_kernel(x_ref, w1_ref, b1_ref, w2_ref, b2_ref, o_ref, acc_ref):
    j = pl.program_id(1)

    @pl.when(j == 0)
    def _():
        acc_ref[...] = jnp.zeros_like(acc_ref)

    # Cast the f32 x tile to the MXU input dtype in-register (no padded bf16
    # copy of x ever hits HBM).
    x = x_ref[...].astype(w1_ref.dtype)
    # First linear (this hidden chunk): f32 accumulation on the MXU.
    h = jnp.dot(x, w1_ref[...], preferred_element_type=jnp.float32)
    # Bias + ReLU in f32 (v5e has no bf16 VPU); cast back to bf16 right away
    # so only the narrow copy stays live into the second matmul.
    h = jnp.maximum(h + b1_ref[...], 0.0).astype(w2_ref.dtype)
    # Second linear: accumulate partial sums over hidden chunks in f32.
    acc_ref[...] += jnp.dot(h, w2_ref[...], preferred_element_type=jnp.float32)

    @pl.when(j == pl.num_programs(1) - 1)
    def _():
        o_ref[...] = (acc_ref[...] + b2_ref[...]).astype(o_ref.dtype)


# ---------------------------------------------------------------------------
# Generation-aware sizing helpers.
# ---------------------------------------------------------------------------
def _default_vmem_limit():
    """VMEM limit from hardware info: v5e/v6e have 128 MiB, v7x 64 MiB."""
    cap = 64 * 1024 * 1024  # conservative fallback (v7x per-core VMEM)
    try:
        cap = int(pltpu.get_tpu_info().vmem_capacity_bytes)
    except Exception:
        pass
    # Leave 8 MiB of headroom for compiler-internal scratch; cap at 112 MiB.
    return max(32 * 1024 * 1024, min(cap - 8 * 1024 * 1024, 112 * 1024 * 1024))


def _auto_tiles(bs, in_dim, hid_p, out_p, out_bytes, vmem_limit_bytes,
                tile_bs_cap=1024, weight_bufs=2):
    """Pick (tile_bs, tile_hid) so the working set fits the VMEM budget."""
    budget = int(vmem_limit_bytes * 0.75)  # safety factor for compiler scratch

    # Hidden-chunk size: largest 128-multiple dividing hid_p whose
    # (conservatively double-buffered, bf16) w1/w2 chunks use <= half budget.
    hid_units = hid_p // 128
    tile_hid = 128
    for n in range(1, hid_units + 1):
        if hid_units % n:
            continue
        th = (hid_units // n) * 128
        if (in_dim * th + th * out_p) * 2 * weight_bufs <= budget // 2:
            tile_hid = th
            break

    w_bytes = (in_dim * tile_hid + tile_hid * out_p) * 2 * weight_bufs
    bias_bytes = (hid_p + out_p) * 4 * weight_bufs
    rem = max(budget - w_bytes - bias_bytes, 0)
    # Per batch-row VMEM: f32 x tile (x2 buffers), out tile (x2) + f32 acc,
    # plus the f32 + bf16 copies of the h intermediate for one hidden chunk.
    per_row = in_dim * 4 * 2 + out_p * (out_bytes * 2 + 4) + tile_hid * 6
    tile_bs = max(16, min(tile_bs_cap, rem // per_row // 16 * 16))

    # v7x megacore: make sure the "parallel" batch axis has >= 2 grid steps
    # for big batches so both TensorCores get work (near-free on 1-TC chips).
    if bs >= 256:
        tile_bs = min(tile_bs, max(128, _round_up(pl.cdiv(bs, 2), 16)))
    tile_bs = min(tile_bs, _round_up(bs, 16))
    return int(tile_bs), int(tile_hid)


# ---------------------------------------------------------------------------
# Parameter preparation (do this ONCE at init, not per forward call).
# ---------------------------------------------------------------------------
def prepare_params(w1, b1, w2, b2, compute_dtype=jnp.bfloat16):
    """Pad feature dims to multiples of 128 and cast weights to MXU dtype.

    Weights are stored transposed relative to nn.Linear ((in, out)), so the
    kernel computes x @ W + b, equivalent to PyTorch's x @ W.T + b.
    The input (contraction) dim of w1 is NOT padded: the x feature axis is
    passed as a full-extent block dim instead.
    """
    in_dim, hid_dim = w1.shape
    out_dim = w2.shape[1]
    hid_p = _round_up(hid_dim, 128)
    out_p = _round_up(out_dim, 128)

    w1_p = jnp.zeros((in_dim, hid_p), compute_dtype).at[:, :hid_dim].set(
        w1.astype(compute_dtype))
    b1_p = jnp.zeros((1, hid_p), jnp.float32).at[0, :hid_dim].set(
        b1.astype(jnp.float32))
    w2_p = jnp.zeros((hid_p, out_p), compute_dtype).at[:hid_dim, :out_dim].set(
        w2.astype(compute_dtype))
    b2_p = jnp.zeros((1, out_p), jnp.float32).at[0, :out_dim].set(
        b2.astype(jnp.float32))

    return dict(w1=w1_p, b1=b1_p, w2=w2_p, b2=b2_p,
                in_dim=in_dim, hid_dim=hid_dim, out_dim=out_dim,
                hid_p=hid_p, out_p=out_p)


# ---------------------------------------------------------------------------
# pallas_call builder + forward wrapper.
# ---------------------------------------------------------------------------
def _build_call(*, tile_bs, tile_hid, in_dim, hid_p, out_p, nb, nh, bs_p,
                out_dtype, vmem_limit_bytes, cost_estimate,
                single_buffer_weights):
    if single_buffer_weights:
        def wspec(shape, index_map):
            return pl.BlockSpec(shape, index_map, pipeline_mode=pl.Buffered(1))
    else:
        def wspec(shape, index_map):
            return pl.BlockSpec(shape, index_map)

    return pl.pallas_call(
        _mlp_kernel,
        out_shape=jax.ShapeDtypeStruct((bs_p, out_p), out_dtype),
        grid=(nb, nh),
        in_specs=[
            # x tile streams over the batch axis; feature axis is full-extent.
            pl.BlockSpec((tile_bs, in_dim), lambda i, j: (i, 0)),
            # Weights / biases: resident (nh == 1) or streamed over hidden.
            wspec((in_dim, tile_hid), lambda i, j: (0, j)),
            wspec((1, tile_hid), lambda i, j: (0, j)),
            wspec((tile_hid, out_p), lambda i, j: (j, 0)),
            wspec((1, out_p), lambda i, j: (0, 0)),
        ],
        out_specs=pl.BlockSpec((tile_bs, out_p), lambda i, j: (i, 0)),
        scratch_shapes=[pltpu.VMEM((tile_bs, out_p), jnp.float32)],
        compiler_params=pltpu.CompilerParams(
            dimension_semantics=("parallel", "arbitrary"),
            vmem_limit_bytes=vmem_limit_bytes),
        cost_estimate=cost_estimate,
    )


def multilayer_dpr_forward(x, params, *, tile_bs=None, tile_hid=None,
                           vmem_limit_bytes=None, out_dtype=None,
                           single_buffer_weights=True):
    """Fused forward pass: l2(relu(l1(x))).

    x      : (bs, input_size) float32
    params : output of prepare_params (pre-padded / pre-cast weights)
    returns: (bs, output_size) in out_dtype (default: x.dtype)
    """
    bs, in_dim = x.shape
    assert in_dim == params["in_dim"], "x feature dim mismatch"
    hid_p, out_p, out_dim = params["hid_p"], params["out_p"], params["out_dim"]
    out_dtype = x.dtype if out_dtype is None else out_dtype
    out_bytes = jnp.dtype(out_dtype).itemsize

    if vmem_limit_bytes is None:
        vmem_limit_bytes = _default_vmem_limit()

    auto_bs, auto_hid = _auto_tiles(bs, in_dim, hid_p, out_p, out_bytes,
                                    vmem_limit_bytes)
    tile_bs = auto_bs if tile_bs is None else tile_bs
    tile_bs = max(16, min(_round_up(tile_bs, 16), _round_up(bs, 16)))
    tile_hid = auto_hid if tile_hid is None else tile_hid
    assert tile_hid % 128 == 0 and hid_p % tile_hid == 0

    bs_p = _round_up(bs, tile_bs)
    nb, nh = bs_p // tile_bs, hid_p // tile_hid

    # Pad only the batch axis of x (skipped entirely when it already divides).
    x_p = x if bs_p == bs else jnp.zeros((bs_p, in_dim), x.dtype).at[:bs].set(x)

    w_read_mult = nb if nh > 1 else 1  # weights re-streamed per batch tile
    w_itemsize = jnp.dtype(params["w1"].dtype).itemsize
    cost = pl.CostEstimate(
        flops=2 * bs_p * (in_dim * hid_p + hid_p * out_p),
        transcendentals=0,
        bytes_accessed=(bs_p * in_dim * jnp.dtype(x.dtype).itemsize
                        + (in_dim * hid_p + hid_p * out_p) * w_itemsize
                        * w_read_mult
                        + bs_p * out_p * out_bytes))

    call_kwargs = dict(tile_bs=tile_bs, tile_hid=tile_hid, in_dim=in_dim,
                       hid_p=hid_p, out_p=out_p, nb=nb, nh=nh, bs_p=bs_p,
                       out_dtype=out_dtype, vmem_limit_bytes=vmem_limit_bytes,
                       cost_estimate=cost)
    args = (x_p, params["w1"], params["b1"], params["w2"], params["b2"])

    out_padded = None
    if single_buffer_weights and nh == 1:
        # Constant-index weights: request single buffering (halves their VMEM
        # footprint).  Fall back to default double-buffering if this JAX /
        # Mosaic build rejects pipeline_mode on the top-level pipeline.
        try:
            out_padded = _build_call(single_buffer_weights=True,
                                     **call_kwargs)(*args)
        except Exception:
            out_padded = None
    if out_padded is None:
        out_padded = _build_call(single_buffer_weights=False,
                                 **call_kwargs)(*args)

    return out_padded[:bs, :out_dim]


def init_params(key, input_size, output_size, dtype=jnp.float32):
    """Deterministic parameter init matching nn.Linear shapes (transposed)."""
    hidden = input_size // 2
    k1, k2, k3, k4 = jax.random.split(key, 4)
    bound1 = 1.0 / (input_size ** 0.5)
    bound2 = 1.0 / (hidden ** 0.5)
    w1 = jax.random.uniform(k1, (input_size, hidden), dtype, -bound1, bound1)
    b1 = jax.random.uniform(k2, (hidden,), dtype, -bound1, bound1)
    w2 = jax.random.uniform(k3, (hidden, output_size), dtype, -bound2, bound2)
    b2 = jax.random.uniform(k4, (output_size,), dtype, -bound2, bound2)
    return w1, b1, w2, b2


if __name__ == "__main__":
    key = jax.random.PRNGKey(0)

    bs = 2
    input_size = 32
    output_size = 16

    k_x, k_p = jax.random.split(key)
    x = jax.random.normal(k_x, (bs, input_size), jnp.float32)
    w1, b1, w2, b2 = init_params(k_p, input_size, output_size)

    params = prepare_params(w1, b1, w2, b2)        # pad/cast weights ONCE
    out = multilayer_dpr_forward(x, params)
    out = jax.block_until_ready(out)
    assert out.shape == (bs, output_size)

    # Reference with identical bf16-input / f32-accumulate numerics.
    xb = x.astype(jnp.bfloat16)
    w1b = w1.astype(jnp.bfloat16)
    w2b = w2.astype(jnp.bfloat16)
    h_ref = jnp.maximum(
        jnp.dot(xb, w1b, preferred_element_type=jnp.float32) + b1, 0.0)
    ref_bf16 = jnp.dot(h_ref.astype(jnp.bfloat16), w2b,
                       preferred_element_type=jnp.float32) + b2
    assert jnp.allclose(out, ref_bf16, atol=1e-4, rtol=1e-4)

    # Loose check against the pure-f32 PyTorch-equivalent reference.
    # (bf16 MXU inputs deviate from PyTorch's f32 matmuls; pass
    #  compute_dtype=jnp.float32 to prepare_params for exact-f32 behaviour.)
    ref_f32 = jnp.maximum(x @ w1 + b1, 0.0) @ w2 + b2
    assert jnp.allclose(out, ref_f32, atol=3e-2, rtol=3e-2)

    print("KERNEL_OK")
</pallas_src>

<mosaic_0001>
module attributes {stable_mosaic.version = 11 : i64} {
  func.func @_mlp_kernel(%arg0: i32, %arg1: i32, %arg2: memref<16x32xf32, #tpu.memory_space<vmem>>, %arg3: memref<32x128xbf16, #tpu.memory_space<vmem>>, %arg4: memref<1x128xf32, #tpu.memory_space<vmem>>, %arg5: memref<128x128xbf16, #tpu.memory_space<vmem>>, %arg6: memref<1x128xf32, #tpu.memory_space<vmem>>, %arg7: memref<16x128xf32, #tpu.memory_space<vmem>>, %arg8: memref<16x128xf32, #tpu.memory_space<vmem>>) attributes {dimension_semantics = [#tpu.dimension_semantics<parallel>, #tpu.dimension_semantics<arbitrary>], iteration_bounds = array<i64: 1, 1>, scalar_prefetch = 0 : i64, scratch_operands = 1 : i64, tpu.core_type = #tpu.core_type<tc>, window_params = [{transform_indices = @transform_0, window_bounds = array<i64: 16, 32>}, {pipeline_mode = #tpu.pipeline_mode<synchronous>, transform_indices = @transform_1, window_bounds = array<i64: 32, 128>}, {pipeline_mode = #tpu.pipeline_mode<synchronous>, transform_indices = @transform_2, window_bounds = array<i64: 1, 128>}, {pipeline_mode = #tpu.pipeline_mode<synchronous>, transform_indices = @transform_3, window_bounds = array<i64: 128, 128>}, {pipeline_mode = #tpu.pipeline_mode<synchronous>, transform_indices = @transform_4, window_bounds = array<i64: 1, 128>}, {transform_indices = @transform_5, window_bounds = array<i64: 16, 128>}]} {
    %c0_i32 = arith.constant 0 : i32
    %0 = arith.cmpi eq, %arg1, %c0_i32 : i32
    %1 = arith.extui %0 : i1 to i32
    %c0_i32_0 = arith.constant 0 : i32
    %2 = arith.cmpi ne, %1, %c0_i32_0 : i32
    scf.if %2 {
      %cst_16 = arith.constant 0.000000e+00 : f32
      %21 = vector.broadcast %cst_16 : f32 to vector<16x128xf32>
      %c0_17 = arith.constant 0 : index
      %c0_18 = arith.constant 0 : index
      %22 = vector.load %arg8[%c0_17, %c0_18] : memref<16x128xf32, #tpu.memory_space<vmem>>, vector<16x128xf32>
      tpu.vector_store %arg8[%c0_17, %c0_18], %21 {strides = array<i32>} : memref<16x128xf32, #tpu.memory_space<vmem>>, vector<16x128xf32>,
    } else {
    }
    %c0 = arith.constant 0 : index
    %c0_1 = arith.constant 0 : index
    %3 = vector.load %arg2[%c0, %c0_1] : memref<16x32xf32, #tpu.memory_space<vmem>>, vector<16x32xf32>
    %4 = arith.truncf %3 : vector<16x32xf32> to vector<16x32xbf16>
    %c0_2 = arith.constant 0 : index
    %c0_3 = arith.constant 0 : index
    %5 = vector.load %arg3[%c0_2, %c0_3] : memref<32x128xbf16, #tpu.memory_space<vmem>>, vector<32x128xbf16>
    %cst = arith.constant dense<0.000000e+00> : vector<16x128xf32>
    %6 = tpu.matmul %4, %5, %cst {dimension_numbers = #tpu.dot_dimension_numbers<[1], [0], [0], [1], [0, 0, 1, 1], [], []>} : vector<16x32xbf16>, vector<32x128xbf16>, vector<16x128xf32> -> vector<16x128xf32>
    %c0_4 = arith.constant 0 : index
    %c0_5 = arith.constant 0 : index
    %7 = vector.load %arg4[%c0_4, %c0_5] : memref<1x128xf32, #tpu.memory_space<vmem>>, vector<1x128xf32>
    %8 = vector.broadcast %7 : vector<1x128xf32> to vector<16x128xf32>
    %9 = arith.addf %6, %8 : vector<16x128xf32>
    %cst_6 = arith.constant 0.000000e+00 : f32
    %10 = vector.broadcast %cst_6 : f32 to vector<16x128xf32>
    %11 = arith.maximumf %9, %10 : vector<16x128xf32>
    %12 = arith.truncf %11 : vector<16x128xf32> to vector<16x128xbf16>
    %c0_7 = arith.constant 0 : index
    %c0_8 = arith.constant 0 : index
    %13 = vector.load %arg8[%c0_7, %c0_8] : memref<16x128xf32, #tpu.memory_space<vmem>>, vector<16x128xf32>
    %c0_9 = arith.constant 0 : index
    %c0_10 = arith.constant 0 : index
    %14 = vector.load %arg5[%c0_9, %c0_10] : memref<128x128xbf16, #tpu.memory_space<vmem>>, vector<128x128xbf16>
    %cst_11 = arith.constant dense<0.000000e+00> : vector<16x128xf32>
    %15 = tpu.matmul %12, %14, %cst_11 {dimension_numbers = #tpu.dot_dimension_numbers<[1], [0], [0], [1], [0, 0, 1, 1], [], []>} : vector<16x128xbf16>, vector<128x128xbf16>, vector<16x128xf32> -> vector<16x128xf32>
    %16 = arith.addf %13, %15 : vector<16x128xf32>
    %c0_12 = arith.constant 0 : index
    %c0_13 = arith.constant 0 : index
    %17 = vector.load %arg8[%c0_12, %c0_13] : memref<16x128xf32, #tpu.memory_space<vmem>>, vector<16x128xf32>
    tpu.vector_store %arg8[%c0_12, %c0_13], %16 {strides = array<i32>} : memref<16x128xf32, #tpu.memory_space<vmem>>, vector<16x128xf32>,
    %c0_i32_14 = arith.constant 0 : i32
    %18 = arith.cmpi eq, %arg1, %c0_i32_14 : i32
    %19 = arith.extui %18 : i1 to i32
    %c0_i32_15 = arith.constant 0 : i32
    %20 = arith.cmpi ne, %19, %c0_i32_15 : i32
    scf.if %20 {
      %c0_16 = arith.constant 0 : index
      %c0_17 = arith.constant 0 : index
      %21 = vector.load %arg8[%c0_16, %c0_17] : memref<16x128xf32, #tpu.memory_space<vmem>>, vector<16x128xf32>
      %c0_18 = arith.constant 0 : index
      %c0_19 = arith.constant 0 : index
      %22 = vector.load %arg6[%c0_18, %c0_19] : memref<1x128xf32, #tpu.memory_space<vmem>>, vector<1x128xf32>
      %23 = vector.broadcast %22 : vector<1x128xf32> to vector<16x128xf32>
      %24 = arith.addf %21, %23 : vector<16x128xf32>
      %c0_20 = arith.constant 0 : index
      %c0_21 = arith.constant 0 : index
      %25 = vector.load %arg7[%c0_20, %c0_21] : memref<16x128xf32, #tpu.memory_space<vmem>>, vector<16x128xf32>
      tpu.vector_store %arg7[%c0_20, %c0_21], %24 {strides = array<i32>} : memref<16x128xf32, #tpu.memory_space<vmem>>, vector<16x128xf32>,
    } else {
    }
    return
  }
  func.func @transform_0(%arg0: i32, %arg1: i32) -> (i32, i32) {
    %c0_i32 = arith.constant 0 : i32
    %c0_i32_0 = arith.constant 0 : i32
    return %arg0, %c0_i32 : i32, i32
  }
  func.func @transform_1(%arg0: i32, %arg1: i32) -> (i32, i32) {
    %c0_i32 = arith.constant 0 : i32
    %c0_i32_0 = arith.constant 0 : i32
    return %c0_i32, %arg1 : i32, i32
  }
  func.func @transform_2(%arg0: i32, %arg1: i32) -> (i32, i32) {
    %c0_i32 = arith.constant 0 : i32
    %c0_i32_0 = arith.constant 0 : i32
    return %c0_i32, %arg1 : i32, i32
  }
  func.func @transform_3(%arg0: i32, %arg1: i32) -> (i32, i32) {
    %c0_i32 = arith.constant 0 : i32
    %c0_i32_0 = arith.constant 0 : i32
    return %arg1, %c0_i32 : i32, i32
  }
  func.func @transform_4(%arg0: i32, %arg1: i32) -> (i32, i32) {
    %c0_i32 = arith.constant 0 : i32
    %c0_i32_0 = arith.constant 0 : i32
    %c0_i32_1 = arith.constant 0 : i32
    return %c0_i32, %c0_i32_0 : i32, i32
  }
  func.func @transform_5(%arg0: i32, %arg1: i32) -> (i32, i32) {
    %c0_i32 = arith.constant 0 : i32
    %c0_i32_0 = arith.constant 0 : i32
    return %arg0, %c0_i32 : i32, i32
  }
}

module attributes {stable_mosaic.version = 11 : i64} {
  func.func @_mlp_kernel(%arg0: i32, %arg1: i32, %arg2: memref<16x32xf32, #tpu.memory_space<vmem>>, %arg3: memref<32x128xbf16, #tpu.memory_space<vmem>>, %arg4: memref<1x128xf32, #tpu.memory_space<vmem>>, %arg5: memref<128x128xbf16, #tpu.memory_space<vmem>>, %arg6: memref<1x128xf32, #tpu.memory_space<vmem>>, %arg7: memref<16x128xf32, #tpu.memory_space<vmem>>, %arg8: memref<16x128xf32, #tpu.memory_space<vmem>>) attributes {dimension_semantics = [#tpu.dimension_semantics<parallel>, #tpu.dimension_semantics<arbitrary>], iteration_bounds = array<i64: 1, 1>, scalar_prefetch = 0 : i64, scratch_operands = 1 : i64, tpu.core_type = #tpu.core_type<tc>, window_params = [{transform_indices = @transform_0, window_bounds = array<i64: 16, 32>}, {transform_indices = @transform_1, window_bounds = array<i64: 32, 128>}, {transform_indices = @transform_2, window_bounds = array<i64: 1, 128>}, {transform_indices = @transform_3, window_bounds = array<i64: 128, 128>}, {pipeline_mode = #tpu.pipeline_mode<synchronous>, transform_indices = @transform_4, window_bounds = array<i64: 1, 128>}, {transform_indices = @transform_5, window_bounds = array<i64: 16, 128>}]} {
    %c0_i32 = arith.constant 0 : i32
    %0 = arith.cmpi eq, %arg1, %c0_i32 : i32
    %1 = arith.extui %0 : i1 to i32
    %c0_i32_0 = arith.constant 0 : i32
    %2 = arith.cmpi ne, %1, %c0_i32_0 : i32
    scf.if %2 {
      %cst_16 = arith.constant 0.000000e+00 : f32
      %21 = vector.broadcast %cst_16 : f32 to vector<16x128xf32>
      %c0_17 = arith.constant 0 : index
      %c0_18 = arith.constant 0 : index
      %22 = vector.load %arg8[%c0_17, %c0_18] : memref<16x128xf32, #tpu.memory_space<vmem>>, vector<16x128xf32>
      tpu.vector_store %arg8[%c0_17, %c0_18], %21 {strides = array<i32>} : memref<16x128xf32, #tpu.memory_space<vmem>>, vector<16x128xf32>,
    } else {
    }
    %c0 = arith.constant 0 : index
    %c0_1 = arith.constant 0 : index
    %3 = vector.load %arg2[%c0, %c0_1] : memref<16x32xf32, #tpu.memory_space<vmem>>, vector<16x32xf32>
    %4 = arith.truncf %3 : vector<16x32xf32> to vector<16x32xbf16>
    %c0_2 = arith.constant 0 : index
    %c0_3 = arith.constant 0 : index
    %5 = vector.load %arg3[%c0_2, %c0_3] : memref<32x128xbf16, #tpu.memory_space<vmem>>, vector<32x128xbf16>
    %cst = arith.constant dense<0.000000e+00> : vector<16x128xf32>
    %6 = tpu.matmul %4, %5, %cst {dimension_numbers = #tpu.dot_dimension_numbers<[1], [0], [0], [1], [0, 0, 1, 1], [], []>} : vector<16x32xbf16>, vector<32x128xbf16>, vector<16x128xf32> -> vector<16x128xf32>
    %c0_4 = arith.constant 0 : index
    %c0_5 = arith.constant 0 : index
    %7 = vector.load %arg4[%c0_4, %c0_5] : memref<1x128xf32, #tpu.memory_space<vmem>>, vector<1x128xf32>
    %8 = vector.broadcast %7 : vector<1x128xf32> to vector<16x128xf32>
    %9 = arith.addf %6, %8 : vector<16x128xf32>
    %cst_6 = arith.constant 0.000000e+00 : f32
    %10 = vector.broadcast %cst_6 : f32 to vector<16x128xf32>
    %11 = arith.maximumf %9, %10 : vector<16x128xf32>
    %12 = arith.truncf %11 : vector<16x128xf32> to vector<16x128xbf16>
    %c0_7 = arith.constant 0 : index
    %c0_8 = arith.constant 0 : index
    %13 = vector.load %arg8[%c0_7, %c0_8] : memref<16x128xf32, #tpu.memory_space<vmem>>, vector<16x128xf32>
    %c0_9 = arith.constant 0 : index
    %c0_10 = arith.constant 0 : index
    %14 = vector.load %arg5[%c0_9, %c0_10] : memref<128x128xbf16, #tpu.memory_space<vmem>>, vector<128x128xbf16>
    %cst_11 = arith.constant dense<0.000000e+00> : vector<16x128xf32>
    %15 = tpu.matmul %12, %14, %cst_11 {dimension_numbers = #tpu.dot_dimension_numbers<[1], [0], [0], [1], [0, 0, 1, 1], [], []>} : vector<16x128xbf16>, vector<128x128xbf16>, vector<16x128xf32> -> vector<16x128xf32>
    %16 = arith.addf %13, %15 : vector<16x128xf32>
    %c0_12 = arith.constant 0 : index
    %c0_13 = arith.constant 0 : index
    %17 = vector.load %arg8[%c0_12, %c0_13] : memref<16x128xf32, #tpu.memory_space<vmem>>, vector<16x128xf32>
    tpu.vector_store %arg8[%c0_12, %c0_13], %16 {strides = array<i32>} : memref<16x128xf32, #tpu.memory_space<vmem>>, vector<16x128xf32>,
    %c0_i32_14 = arith.constant 0 : i32
    %18 = arith.cmpi eq, %arg1, %c0_i32_14 : i32
    %19 = arith.extui %18 : i1 to i32
    %c0_i32_15 = arith.constant 0 : i32
    %20 = arith.cmpi ne, %19, %c0_i32_15 : i32
    scf.if %20 {
      %c0_16 = arith.constant 0 : index
      %c0_17 = arith.constant 0 : index
      %21 = vector.load %arg8[%c0_16, %c0_17] : memref<16x128xf32, #tpu.memory_space<vmem>>, vector<16x128xf32>
      %c0_18 = arith.constant 0 : index
      %c0_19 = arith.constant 0 : index
      %22 = vector.load %arg6[%c0_18, %c0_19] : memref<1x128xf32, #tpu.memory_space<vmem>>, vector<1x128xf32>
      %23 = vector.broadcast %22 : vector<1x128xf32> to vector<16x128xf32>
      %24 = arith.addf %21, %23 : vector<16x128xf32>
      %c0_20 = arith.constant 0 : index
      %c0_21 = arith.constant 0 : index
      %25 = vector.load %arg7[%c0_20, %c0_21] : memref<16x128xf32, #tpu.memory_space<vmem>>, vector<16x128xf32>
      tpu.vector_store %arg7[%c0_20, %c0_21], %24 {strides = array<i32>} : memref<16x128xf32, #tpu.memory_space<vmem>>, vector<16x128xf32>,
    } else {
    }
    return
  }
  func.func @transform_0(%arg0: i32, %arg1: i32) -> (i32, i32) {
    %c0_i32 = arith.constant 0 : i32
    %c0_i32_0 = arith.constant 0 : i32
    return %arg0, %c0_i32 : i32, i32
  }
  func.func @transform_1(%arg0: i32, %arg1: i32) -> (i32, i32) {
    %c0_i32 = arith.constant 0 : i32
    %c0_i32_0 = arith.constant 0 : i32
    return %c0_i32, %arg1 : i32, i32
  }
  func.func @transform_2(%arg0: i32, %arg1: i32) -> (i32, i32) {
    %c0_i32 = arith.constant 0 : i32
    %c0_i32_0 = arith.constant 0 : i32
    return %c0_i32, %arg1 : i32, i32
  }
  func.func @transform_3(%arg0: i32, %arg1: i32) -> (i32, i32) {
    %c0_i32 = arith.constant 0 : i32
    %c0_i32_0 = arith.constant 0 : i32
    return %arg1, %c0_i32 : i32, i32
  }
  func.func @transform_4(%arg0: i32, %arg1: i32) -> (i32, i32) {
    %c0_i32 = arith.constant 0 : i32
    %c0_i32_0 = arith.constant 0 : i32
    %c0_i32_1 = arith.constant 0 : i32
    return %c0_i32, %c0_i32_0 : i32, i32
  }
  func.func @transform_5(%arg0: i32, %arg1: i32) -> (i32, i32) {
    %c0_i32 = arith.constant 0 : i32
    %c0_i32_0 = arith.constant 0 : i32
    return %arg0, %c0_i32 : i32, i32
  }
}

</mosaic_0001>

<bundles_post_ra>
// kernel: tpu_custom_call.1
= control target key start
LH: loop header
LB: loop body
LE: loop exit
PB: predicated region body
PF: predicated region fallthrough
CT: control target
= control target key end

     0   :  { %10 = vsyncpa [#allocation4], 0  ;;  %s461_s0 = inlined_call_operand.hbm [shape: f32[16,32], index: 0, kind: input, shape index: {}]   ;;  %s462_s1 = inlined_call_operand.hbm [shape: bf16[32,128], index: 1, kind: input, shape index: {}]   ;;  %s463_s2 = inlined_call_operand.vmem [shape: f32[1,128], index: 2, kind: input, shape index: {}]   ;;  %s464_s3 = inlined_call_operand.hbm [shape: bf16[128,128], index: 3, kind: input, shape index: {}]   ;;  %s465_s4 = inlined_call_operand.vmem [shape: f32[1,128], index: 4, kind: input, shape index: {}]   ;;  %s466_s5 = inlined_call_operand.hbm [shape: f32[16,128], index: 5, kind: output, shape index: {}]  }
   0x1   :  { %11 = vsyncpa [#allocation7], 0  ;;  %s30_s20 = sshll.u32 %s462_s1, 4  ;;  %s31_s20 = int_to_ptr.hbm [resolvable:$true] %s30_s20 }
   0x2   :  { %12 = vsyncpa [#allocation5], 0  ;;  %s399_s21 = smov [#allocation6]   ;;  %s17_s25 = sshll.u32 %s461_s0, 4  ;;  %s18_s25 = int_to_ptr.hbm [resolvable:$true] %s17_s25 }
   0x3   :  { %s32_s22 = sshll.u32 %s399_s21, 4  ;;  %s400_s26 = smov 64   ;;  %s33_s22 = int_to_ptr.vmem [resolvable:$true] %s32_s22 }
   0x4   :  { %s401_s27 = smov 4   ;;  %s402_s28 = smov [#allocation3]  }
   0x5   :  { %38 = dma.hbm_to_vmem [thread:$0]  %s31_s20, 256, %s33_s22, [#allocation7], %s400_s26, %s400_s26, %s401_s27  }
   0x6   :  { %s19_s29 = sshll.u32 %s402_s28, 4  ;;  %s403_s30 = smov 128   ;;  %s20_s29 = int_to_ptr.vmem [resolvable:$true] %s19_s29 }
   0x7   :  { %s404_s6 = smov 8   ;;  %s45_s8 = sshll.u32 %s464_s3, 4  ;;  %s46_s8 = int_to_ptr.hbm [resolvable:$true] %s45_s8 }
   0x8   :  { %25 = dma.hbm_to_vmem [thread:$0]  %s18_s25, 256, %s20_s29, [#allocation4], %s403_s30, %s403_s30, %s404_s6  }
   0x9   :  { %s405_s9 = smov [#allocation8]  }
   0xa   :  { %s47_s0 = sshll.u32 %s405_s9, 4  ;;  %s48_s0 = int_to_ptr.vmem [resolvable:$true] %s47_s0 }
   0xb   :  { %53 = dma.hbm_to_vmem [thread:$0]  %s46_s8, 1024, %s48_s0, [#allocation7], %s400_s26, %s400_s26, %s401_s27  }
   0xc   :  { %393 = dma.done.wait [#allocation4], 256  }
   0xd   :  { %394 = vsyncadd [#allocation4], 4294967040 }
   0xe   :  { %395 = dma.done.wait [#allocation7], 1280  }
   0xf   :  { %396 = vsyncadd [#allocation7], 4294966016  ;;  %v278_v0 = vld [vmem:[#allocation6 + $0x8] sm:$0xff]  ;;  %v277_v1 = vld [vmem:[#allocation6] sm:$0xff]  ;;  %vm98_vm0 = vcmask 261120   ;;  %s406_s13 = smov [#allocation9]  }
  0x10   :  { %v286_v2 = vld [vmem:[#allocation8 + $0x38] sm:$0xff]  ;;  %108 = vmatpush.bf16.msra.mxu0 %v278_v0  ;;  %v75_v3 = vld [vmem:[#allocation3] sm:$0xff]  ;;  %v76_v4 = vld [vmem:[#allocation3 + $0x8] sm:$0xff]  ;;  %s220_s14 = sshll.u32 %s406_s13, 4  ;;  %s221_s14 = int_to_ptr.vmem [resolvable:$true] %s220_s14 }
  0x11   :  { %185 = vmatpush.bf16.msra.mxu1 %v286_v2  ;;  %v285_v5 = vld [vmem:[#allocation8 + $0x30] sm:$0xff]  ;;  %v77_v6 = vpack.c.bf16 %v76_v4, %v75_v3  ;;  %v284_v7 = vld [vmem:[#allocation8 + $0x28] sm:$0xff]  ;;  %v283_v8 = vld [vmem:[#allocation8 + $0x20] sm:$0xff] }
  0x12   :  { %v282_v9 = vld [vmem:[#allocation8 + $0x18] sm:$0xff]  ;;  %v281_v10 = vld [vmem:[#allocation8 + $0x10] sm:$0xff]  ;;  %v280_v11 = vld [vmem:[#allocation8 + $0x8] sm:$0xff] }
  0x13   :  { %v279_v12 = vld [vmem:[#allocation8] sm:$0xff] }
  0x14   :  { %109 = vmatpush.bf16.msra.mxu0 %v277_v1  ;;  %v295_v14 = vld [vmem:[%s463_s2] ss:$0 sm:$0xff]  ;;  %s222_s2 = sshll.u32 %s466_s5, 4  ;;  %s223_s2 = int_to_ptr.hbm [resolvable:$true] %s222_s2 }
  0x15   :  { %186 = vmatpush.bf16.msra.mxu1 %v285_v5  ;;  %v296_v21 = vld [vmem:[%s465_s4] ss:$0 sm:$0xff] }
  0x17   :  { %244 = vmatmul.msk.bf16.vlgmr.msra.gmra.mxu0 %vm98_vm0, %v77_v6 }
  0x19   :  { %187 = vmatpush.bf16.msra.mxu1 %v284_v7 }
  0x1d   :  { %188 = vmatpush.bf16.msra.mxu1 %v283_v8 }
  0x21   :  { %189 = vmatpush.bf16.msra.mxu1 %v282_v9 }
  0x25   :  { %190 = vmatpush.bf16.msra.mxu1 %v281_v10 }
  0x29   :  { %191 = vmatpush.bf16.msra.mxu1 %v280_v11 }
  0x2d   :  { %192 = vmatpush.bf16.msra.mxu1 %v279_v12 }
  0x94   :  { %v111_v13 = vpop.f32.mrf.mxu0 }
  0x95   :  { %v112_v15 = vadd.f32 %v295_v14, %v111_v13 }
  0x97   :  { %v116_v18 = vmax.f32 %v112_v15, 0.0 }
  0x9c   :  { %v113_v16 = vpop.f32.mrf.mxu0 }
  0x9d   :  { %v114_v17 = vadd.f32 %v295_v14, %v113_v16 }
  0x9f   :  { %v117_v19 = vmax.f32 %v114_v17, 0.0 }
  0xa1   :  { %v118_v20 = vpack.c.bf16 %v117_v19, %v116_v18 }
  0xa3   :  { %193 = vmatmul.bf16.vlgmr.msra.gmra.mxu1 %v118_v20 }
 0x120   :  { %v194_v22 = vpop.f32.mrf.mxu1 }
 0x121   :  { %v212_v23 = vadd.f32 %v296_v21, %v194_v22 }
 0x123   :  { %214 = vst [vmem:[#allocation9] sm:$0xff] %v212_v23 }
 0x128   :  { %v196_v24 = vpop.f32.mrf.mxu1 }
 0x129   :  { %v213_v25 = vadd.f32 %v296_v21, %v196_v24 }
 0x12b   :  { %215 = vst [vmem:[#allocation9 + $0x8] sm:$0xff] %v213_v25 }
 0x12c   :  { %228 = dma.vmem_to_hbm [thread:$0]  %s221_s14, 256, %s223_s2, [#allocation5], %s403_s30, %s403_s30, %s404_s6  }
 0x12d   :  { %397 = dma.done.wait [#allocation5], 256  }
 0x12e   :  { %398 = vsyncadd [#allocation5], 4294967040 }
 0x12f   :  { %233 = vsyncpa [#allocation4], 1 }
 0x130   :  { %234 = vsyncpa [#allocation7], 1 }
 0x131   :  { %235 = vsyncpa [#allocation5], 1 }

// kernel: tpu_custom_call.1
= control target key start
LH: loop header
LB: loop body
LE: loop exit
PB: predicated region body
PF: predicated region fallthrough
CT: control target
= control target key end

     0   :  { %10 = vsyncpa [#allocation4], 0  ;;  %s461_s0 = inlined_call_operand.hbm [shape: f32[16,32], index: 0, kind: input, shape index: {}]   ;;  %s462_s1 = inlined_call_operand.hbm [shape: bf16[32,128], index: 1, kind: input, shape index: {}]   ;;  %s463_s2 = inlined_call_operand.vmem [shape: f32[1,128], index: 2, kind: input, shape index: {}]   ;;  %s464_s3 = inlined_call_operand.hbm [shape: bf16[128,128], index: 3, kind: input, shape index: {}]   ;;  %s465_s4 = inlined_call_operand.vmem [shape: f32[1,128], index: 4, kind: input, shape index: {}]   ;;  %s466_s5 = inlined_call_operand.hbm [shape: f32[16,128], index: 5, kind: output, shape index: {}]  }
   0x1   :  { %11 = vsyncpa [#allocation7], 0  ;;  %s30_s20 = sshll.u32 %s462_s1, 4  ;;  %s31_s20 = int_to_ptr.hbm [resolvable:$true] %s30_s20 }
   0x2   :  { %12 = vsyncpa [#allocation5], 0  ;;  %s399_s21 = smov [#allocation6]   ;;  %s17_s25 = sshll.u32 %s461_s0, 4  ;;  %s18_s25 = int_to_ptr.hbm [resolvable:$true] %s17_s25 }
   0x3   :  { %s32_s22 = sshll.u32 %s399_s21, 4  ;;  %s400_s26 = smov 64   ;;  %s33_s22 = int_to_ptr.vmem [resolvable:$true] %s32_s22 }
   0x4   :  { %s401_s27 = smov 4   ;;  %s402_s28 = smov [#allocation3]  }
   0x5   :  { %38 = dma.hbm_to_vmem [thread:$0]  %s31_s20, 256, %s33_s22, [#allocation7], %s400_s26, %s400_s26, %s401_s27  }
   0x6   :  { %s19_s29 = sshll.u32 %s402_s28, 4  ;;  %s403_s30 = smov 128   ;;  %s20_s29 = int_to_ptr.vmem [resolvable:$true] %s19_s29 }
   0x7   :  { %s404_s6 = smov 8   ;;  %s45_s8 = sshll.u32 %s464_s3, 4  ;;  %s46_s8 = int_to_ptr.hbm [resolvable:$true] %s45_s8 }
   0x8   :  { %25 = dma.hbm_to_vmem [thread:$0]  %s18_s25, 256, %s20_s29, [#allocation4], %s403_s30, %s403_s30, %s404_s6  }
   0x9   :  { %s405_s9 = smov [#allocation8]  }
   0xa   :  { %s47_s0 = sshll.u32 %s405_s9, 4  ;;  %s48_s0 = int_to_ptr.vmem [resolvable:$true] %s47_s0 }
   0xb   :  { %53 = dma.hbm_to_vmem [thread:$0]  %s46_s8, 1024, %s48_s0, [#allocation7], %s400_s26, %s400_s26, %s401_s27  }
   0xc   :  { %393 = dma.done.wait [#allocation4], 256  }
   0xd   :  { %394 = vsyncadd [#allocation4], 4294967040 }
   0xe   :  { %395 = dma.done.wait [#allocation7], 1280  }
   0xf   :  { %396 = vsyncadd [#allocation7], 4294966016  ;;  %v278_v0 = vld [vmem:[#allocation6 + $0x8] sm:$0xff]  ;;  %v277_v1 = vld [vmem:[#allocation6] sm:$0xff]  ;;  %vm98_vm0 = vcmask 261120   ;;  %s406_s13 = smov [#allocation9]  }
  0x10   :  { %v286_v2 = vld [vmem:[#allocation8 + $0x38] sm:$0xff]  ;;  %108 = vmatpush.bf16.msra.mxu0 %v278_v0  ;;  %v75_v3 = vld [vmem:[#allocation3] sm:$0xff]  ;;  %v76_v4 = vld [vmem:[#allocation3 + $0x8] sm:$0xff]  ;;  %s220_s14 = sshll.u32 %s406_s13, 4  ;;  %s221_s14 = int_to_ptr.vmem [resolvable:$true] %s220_s14 }
  0x11   :  { %185 = vmatpush.bf16.msra.mxu1 %v286_v2  ;;  %v285_v5 = vld [vmem:[#allocation8 + $0x30] sm:$0xff]  ;;  %v77_v6 = vpack.c.bf16 %v76_v4, %v75_v3  ;;  %v284_v7 = vld [vmem:[#allocation8 + $0x28] sm:$0xff]  ;;  %v283_v8 = vld [vmem:[#allocation8 + $0x20] sm:$0xff] }
  0x12   :  { %v282_v9 = vld [vmem:[#allocation8 + $0x18] sm:$0xff]  ;;  %v281_v10 = vld [vmem:[#allocation8 + $0x10] sm:$0xff]  ;;  %v280_v11 = vld [vmem:[#allocation8 + $0x8] sm:$0xff] }
  0x13   :  { %v279_v12 = vld [vmem:[#allocation8] sm:$0xff] }
  0x14   :  { %109 = vmatpush.bf16.msra.mxu0 %v277_v1  ;;  %v295_v14 = vld [vmem:[%s463_s2] ss:$0 sm:$0xff]  ;;  %s222_s2 = sshll.u32 %s466_s5, 4  ;;  %s223_s2 = int_to_ptr.hbm [resolvable:$true] %s222_s2 }
  0x15   :  { %186 = vmatpush.bf16.msra.mxu1 %v285_v5  ;;  %v296_v21 = vld [vmem:[%s465_s4] ss:$0 sm:$0xff] }
  0x17   :  { %244 = vmatmul.msk.bf16.vlgmr.msra.gmra.mxu0 %vm98_vm0, %v77_v6 }
  0x19   :  { %187 = vmatpush.bf16.msra.mxu1 %v284_v7 }
  0x1d   :  { %188 = vmatpush.bf16.msra.mxu1 %v283_v8 }
  0x21   :  { %189 = vmatpush.bf16.msra.mxu1 %v282_v9 }
  0x25   :  { %190 = vmatpush.bf16.msra.mxu1 %v281_v10 }
  0x29   :  { %191 = vmatpush.bf16.msra.mxu1 %v280_v11 }
  0x2d   :  { %192 = vmatpush.bf16.msra.mxu1 %v279_v12 }
  0x94   :  { %v111_v13 = vpop.f32.mrf.mxu0 }
  0x95   :  { %v112_v15 = vadd.f32 %v295_v14, %v111_v13 }
  0x97   :  { %v116_v18 = vmax.f32 %v112_v15, 0.0 }
  0x9c   :  { %v113_v16 = vpop.f32.mrf.mxu0 }
  0x9d   :  { %v114_v17 = vadd.f32 %v295_v14, %v113_v16 }
  0x9f   :  { %v117_v19 = vmax.f32 %v114_v17, 0.0 }
  0xa1   :  { %v118_v20 = vpack.c.bf16 %v117_v19, %v116_v18 }
  0xa3   :  { %193 = vmatmul.bf16.vlgmr.msra.gmra.mxu1 %v118_v20 }
 0x120   :  { %v194_v22 = vpop.f32.mrf.mxu1 }
 0x121   :  { %v212_v23 = vadd.f32 %v296_v21, %v194_v22 }
 0x123   :  { %214 = vst [vmem:[#allocation9] sm:$0xff] %v212_v23 }
 0x128   :  { %v196_v24 = vpop.f32.mrf.mxu1 }
 0x129   :  { %v213_v25 = vadd.f32 %v296_v21, %v196_v24 }
 0x12b   :  { %215 = vst [vmem:[#allocation9 + $0x8] sm:$0xff] %v213_v25 }
 0x12c   :  { %228 = dma.vmem_to_hbm [thread:$0]  %s221_s14, 256, %s223_s2, [#allocation5], %s403_s30, %s403_s30, %s404_s6  }
 0x12d   :  { %397 = dma.done.wait [#allocation5], 256  }
 0x12e   :  { %398 = vsyncadd [#allocation5], 4294967040 }
 0x12f   :  { %233 = vsyncpa [#allocation4], 1 }
 0x130   :  { %234 = vsyncpa [#allocation7], 1 }
 0x131   :  { %235 = vsyncpa [#allocation5], 1 }

</bundles_post_ra>
